<compile_context>
chip_gen: v7x
topology: tpu7x:2x2x1
jax: 0.10.0
libtpu: 0.0.40
codegen_flags: <defaults>
</compile_context>

<pallas_src>
import jax
import jax.numpy as jnp
from jax.experimental import pallas as pl
from jax.experimental.pallas import tpu as pltpu


def _round_up(v, m):
    return (v + m - 1) // m * m


def mlp_kernel(x_ref, w_ref, b_ref, o_ref):
    # One MXU matmul (f32 accumulation) + one VPU bias add, all in VMEM.
    acc = jnp.dot(x_ref[...], w_ref[...], preferred_element_type=jnp.float32)
    o_ref[...] = (acc + b_ref[...]).astype(o_ref.dtype)


def collapse_params(params):
    """Collapse the 4 activation-free Linear layers into one effective Linear.

    params = (w1, b1, w2, b2, w3, b3, w4, b4), wN as (in, out), bN as (1, out).
    Run once per weight set and reuse the result for repeated forward calls.
    """
    w1, b1, w2, b2, w3, b3, w4, b4 = params
    in_f, out_f = w1.shape[0], w4.shape[1]
    if in_f < out_f:
        w_eff = ((w1 @ w2) @ w3) @ w4          # left-assoc cheaper when in_f < out_f
    else:
        w_eff = w1 @ (w2 @ (w3 @ w4))          # right-assoc cheaper otherwise
    b_eff = ((b1 @ w2 + b2) @ w3 + b3) @ w4 + b4
    return w_eff, b_eff


def _vmem_capacity_bytes():
    try:
        return int(pltpu.get_tpu_info().vmem_capacity_bytes)
    except Exception:
        return 64 * 1024 * 1024  # conservative fallback: v7x physical VMEM per TC


def metrics_model_v1_collapsed(x, w_eff, b_eff, *, batch_tile=None,
                               compute_dtype=jnp.bfloat16,
                               out_dtype=jnp.float32):
    """Single-matmul forward on pre-collapsed (W_eff, b_eff)."""
    B, in_f = x.shape
    out_f = w_eff.shape[1]

    x_bytes = jnp.dtype(compute_dtype).itemsize
    w_bytes = x_bytes
    o_bytes = jnp.dtype(out_dtype).itemsize
    sublane = {1: 32, 2: 16}.get(x_bytes, 8)   # packed-sublane granularity

    LANE = 128
    # Lane padding only when the pad ratio is <= 2 (out_f >= 64); narrow outputs
    # keep their native width and accept masked stores instead of 8x write bytes.
    out_p = _round_up(out_f, LANE) if out_f >= LANE // 2 else out_f

    # --- generation-aware VMEM budget ---
    cap = _vmem_capacity_bytes()
    budget = (3 * cap) // 4
    slack = 1 << 20

    # --- output-feature tiling: only tile when the full weight would blow budget ---
    if out_p % LANE == 0 and 2 * in_f * out_p * w_bytes > budget // 2:
        tn = ((budget // 2) // max(1, 2 * in_f * w_bytes)) // LANE * LANE
        tn = max(LANE, min(tn, out_p))
        out_p = _round_up(out_p, tn)           # make tn divide out_p exactly
    else:
        tn = out_p
    nt = out_p // tn
    single_buffer_wb = (nt == 1)               # weight/bias grid-invariant then
    w_buffers = 1 if single_buffer_wb else 2

    if out_p != out_f:
        w_eff = jnp.pad(w_eff, ((0, 0), (0, out_p - out_f)))
        b_eff = jnp.pad(b_eff, ((0, 0), (0, out_p - out_f)))

    # --- batch tiling from the remaining budget ---
    Bp_min = _round_up(B, sublane)
    w_resident = w_buffers * in_f * tn * w_bytes + tn * 4          # + f32 bias row
    per_row = 2 * in_f * x_bytes + 2 * tn * o_bytes                # dbl-buffered x & out
    if batch_tile is None:
        fit = (budget - slack - w_resident) // max(1, per_row)
        batch_tile = int(max(sublane, min(fit, 2048)))
    batch_tile = min(_round_up(int(batch_tile), sublane), Bp_min)

    # v7x has 2 TensorCores: ensure the parallel grid has >= 2 steps when possible.
    if nt == 1 and batch_tile >= Bp_min and Bp_min >= 2 * sublane:
        batch_tile = _round_up(-(-Bp_min // 2), sublane)

    Bp = _round_up(B, batch_tile)
    nb = Bp // batch_tile

    # --- host-side pad / cast only when actually needed ---
    x_in = x
    if Bp != B:
        x_in = jnp.pad(x_in, ((0, Bp - B), (0, 0)))
    if x_in.dtype != compute_dtype:
        x_in = x_in.astype(compute_dtype)
    w_in = w_eff.astype(compute_dtype) if w_eff.dtype != compute_dtype else w_eff
    b_in = b_eff.astype(jnp.float32)

    need = (w_buffers * in_f * tn * w_bytes + tn * 4
            + 2 * batch_tile * in_f * x_bytes
            + 2 * batch_tile * tn * o_bytes + slack)
    vmem_limit = int(min(max(need + (2 << 20), 16 << 20), cap))

    def run(single_buffer):
        wb_kwargs = {}
        if single_buffer and hasattr(pl, "Buffered"):
            wb_kwargs = dict(pipeline_mode=pl.Buffered(1))
        x_spec = pl.BlockSpec((batch_tile, in_f), lambda i, j: (i, 0))
        w_spec = pl.BlockSpec((in_f, tn), lambda i, j: (0, j), **wb_kwargs)
        b_spec = pl.BlockSpec((1, tn), lambda i, j: (0, j), **wb_kwargs)
        o_spec = pl.BlockSpec((batch_tile, tn), lambda i, j: (i, j))
        return pl.pallas_call(
            mlp_kernel,
            out_shape=jax.ShapeDtypeStruct((Bp, out_p), out_dtype),
            grid_spec=pltpu.PrefetchScalarGridSpec(
                num_scalar_prefetch=0,
                grid=(nb, nt),
                in_specs=[x_spec, w_spec, b_spec],
                out_specs=o_spec,
            ),
            compiler_params=pltpu.CompilerParams(
                dimension_semantics=("parallel", "parallel"),
                vmem_limit_bytes=vmem_limit,
            ),
        )(x_in, w_in, b_in)

    try:
        out_padded = run(single_buffer_wb)
    except Exception:
        if not single_buffer_wb:
            raise
        out_padded = run(False)   # fallback if Buffered(1) is rejected by this JAX

    out = out_padded
    if Bp != B:
        out = out[:B]
    if out_p != out_f:
        out = out[:, :out_f]
    return out


def metrics_model_v1(x, params, **kwargs):
    """Forward of MetricsModelV1 (4 chained Linears, no activations).

    For repeated calls with fixed weights, hoist collapse_params(params) and call
    metrics_model_v1_collapsed directly.
    """
    w_eff, b_eff = collapse_params(params)
    return metrics_model_v1_collapsed(x, w_eff, b_eff, **kwargs)


def init_params(key, input_features, output_features, hidden_units):
    """PyTorch-style uniform(-1/sqrt(fan_in), 1/sqrt(fan_in)) init.
    Weights as (in, out), biases as (1, out)."""
    dims = [(input_features, hidden_units),
            (hidden_units, hidden_units),
            (hidden_units, hidden_units),
            (hidden_units, output_features)]
    params = []
    for fan_in, fan_out in dims:
        key, kw, kb = jax.random.split(key, 3)
        bound = 1.0 / jnp.sqrt(jnp.float32(fan_in))
        w = jax.random.uniform(kw, (fan_in, fan_out), jnp.float32, -bound, bound)
        b = jax.random.uniform(kb, (1, fan_out), jnp.float32, -bound, bound)
        params.extend([w, b])
    return tuple(params)


def reference(x, params):
    """Layer-by-layer reference (matches the PyTorch module op-for-op)."""
    w1, b1, w2, b2, w3, b3, w4, b4 = params
    h = x @ w1 + b1
    h = h @ w2 + b2
    h = h @ w3 + b3
    return h @ w4 + b4


if __name__ == "__main__":
    input_features = 32
    hidden_units = 32
    output_features = 16
    batch = 16

    key = jax.random.PRNGKey(0)
    key, kx = jax.random.split(key)
    x = jax.random.normal(kx, (batch, input_features), jnp.float32)
    params = init_params(key, input_features, output_features, hidden_units)

    ref = reference(x, params)

    # f32 operand path: tight tolerance vs layer-by-layer reference (collapsed-chain
    # accumulation order differs slightly); grid = (2, 1) so both v7x TCs are used.
    out_f32 = metrics_model_v1(x, params, compute_dtype=jnp.float32)
    out_f32 = jax.block_until_ready(out_f32)
    assert out_f32.shape == (batch, output_features)
    assert jnp.allclose(out_f32, ref, atol=5e-4, rtol=5e-4), "f32 mismatch vs reference"

    # Default bf16-operand path (f32 accumulation): halves HBM bytes; looser tol.
    out_bf16 = metrics_model_v1(x, params)
    out_bf16 = jax.block_until_ready(out_bf16)
    assert out_bf16.shape == (batch, output_features)
    assert jnp.allclose(out_bf16, ref, atol=5e-2, rtol=5e-2), "bf16 mismatch vs reference"

    print("KERNEL_OK")
</pallas_src>

<mosaic_0001>
module attributes {stable_mosaic.version = 11 : i64} {
  func.func @mlp_kernel(%arg0: i32, %arg1: i32, %arg2: memref<8x32xf32, #tpu.memory_space<vmem>>, %arg3: memref<32x16xf32, #tpu.memory_space<vmem>>, %arg4: memref<1x16xf32, #tpu.memory_space<vmem>>, %arg5: memref<8x16xf32, #tpu.memory_space<vmem>>) attributes {dimension_semantics = [#tpu.dimension_semantics<parallel>, #tpu.dimension_semantics<parallel>], iteration_bounds = array<i64: 2, 1>, scalar_prefetch = 0 : i64, scratch_operands = 0 : i64, tpu.core_type = #tpu.core_type<tc>, window_params = [{transform_indices = @transform_0, window_bounds = array<i64: 8, 32>}, {pipeline_mode = #tpu.pipeline_mode<synchronous>, transform_indices = @transform_1, window_bounds = array<i64: 32, 16>}, {pipeline_mode = #tpu.pipeline_mode<synchronous>, transform_indices = @transform_2, window_bounds = array<i64: 1, 16>}, {transform_indices = @transform_3, window_bounds = array<i64: 8, 16>}]} {
    %c0 = arith.constant 0 : index
    %c0_0 = arith.constant 0 : index
    %0 = vector.load %arg2[%c0, %c0_0] : memref<8x32xf32, #tpu.memory_space<vmem>>, vector<8x32xf32>
    %c0_1 = arith.constant 0 : index
    %c0_2 = arith.constant 0 : index
    %1 = vector.load %arg3[%c0_1, %c0_2] : memref<32x16xf32, #tpu.memory_space<vmem>>, vector<32x16xf32>
    %cst = arith.constant dense<0.000000e+00> : vector<8x16xf32>
    %2 = tpu.matmul %0, %1, %cst {dimension_numbers = #tpu.dot_dimension_numbers<[1], [0], [0], [1], [0, 0, 1, 1], [], []>} : vector<8x32xf32>, vector<32x16xf32>, vector<8x16xf32> -> vector<8x16xf32>
    %c0_3 = arith.constant 0 : index
    %c0_4 = arith.constant 0 : index
    %3 = vector.load %arg4[%c0_3, %c0_4] : memref<1x16xf32, #tpu.memory_space<vmem>>, vector<1x16xf32>
    %4 = vector.broadcast %3 : vector<1x16xf32> to vector<8x16xf32>
    %5 = arith.addf %2, %4 : vector<8x16xf32>
    %c0_5 = arith.constant 0 : index
    %c0_6 = arith.constant 0 : index
    %6 = vector.load %arg5[%c0_5, %c0_6] : memref<8x16xf32, #tpu.memory_space<vmem>>, vector<8x16xf32>
    tpu.vector_store %arg5[%c0_5, %c0_6], %5 {strides = array<i32>} : memref<8x16xf32, #tpu.memory_space<vmem>>, vector<8x16xf32>,
    return
  }
  func.func @transform_0(%arg0: i32, %arg1: i32) -> (i32, i32) {
    %c0_i32 = arith.constant 0 : i32
    %c0_i32_0 = arith.constant 0 : i32
    return %arg0, %c0_i32 : i32, i32
  }
  func.func @transform_1(%arg0: i32, %arg1: i32) -> (i32, i32) {
    %c0_i32 = arith.constant 0 : i32
    %c0_i32_0 = arith.constant 0 : i32
    return %c0_i32, %arg1 : i32, i32
  }
  func.func @transform_2(%arg0: i32, %arg1: i32) -> (i32, i32) {
    %c0_i32 = arith.constant 0 : i32
    %c0_i32_0 = arith.constant 0 : i32
    return %c0_i32, %arg1 : i32, i32
  }
  func.func @transform_3(%arg0: i32, %arg1: i32) -> (i32, i32) {
    %c0_i32 = arith.constant 0 : i32
    return %arg0, %arg1 : i32, i32
  }
}

module attributes {stable_mosaic.version = 11 : i64} {
  func.func @mlp_kernel(%arg0: i32, %arg1: i32, %arg2: memref<8x32xf32, #tpu.memory_space<vmem>>, %arg3: memref<32x16xf32, #tpu.memory_space<vmem>>, %arg4: memref<1x16xf32, #tpu.memory_space<vmem>>, %arg5: memref<8x16xf32, #tpu.memory_space<vmem>>) attributes {dimension_semantics = [#tpu.dimension_semantics<parallel>, #tpu.dimension_semantics<parallel>], iteration_bounds = array<i64: 2, 1>, scalar_prefetch = 0 : i64, scratch_operands = 0 : i64, tpu.core_type = #tpu.core_type<tc>, window_params = [{transform_indices = @transform_0, window_bounds = array<i64: 8, 32>}, {transform_indices = @transform_1, window_bounds = array<i64: 32, 16>}, {transform_indices = @transform_2, window_bounds = array<i64: 1, 16>}, {transform_indices = @transform_3, window_bounds = array<i64: 8, 16>}]} {
    %c0 = arith.constant 0 : index
    %c0_0 = arith.constant 0 : index
    %0 = vector.load %arg2[%c0, %c0_0] : memref<8x32xf32, #tpu.memory_space<vmem>>, vector<8x32xf32>
    %c0_1 = arith.constant 0 : index
    %c0_2 = arith.constant 0 : index
    %1 = vector.load %arg3[%c0_1, %c0_2] : memref<32x16xf32, #tpu.memory_space<vmem>>, vector<32x16xf32>
    %cst = arith.constant dense<0.000000e+00> : vector<8x16xf32>
    %2 = tpu.matmul %0, %1, %cst {dimension_numbers = #tpu.dot_dimension_numbers<[1], [0], [0], [1], [0, 0, 1, 1], [], []>} : vector<8x32xf32>, vector<32x16xf32>, vector<8x16xf32> -> vector<8x16xf32>
    %c0_3 = arith.constant 0 : index
    %c0_4 = arith.constant 0 : index
    %3 = vector.load %arg4[%c0_3, %c0_4] : memref<1x16xf32, #tpu.memory_space<vmem>>, vector<1x16xf32>
    %4 = vector.broadcast %3 : vector<1x16xf32> to vector<8x16xf32>
    %5 = arith.addf %2, %4 : vector<8x16xf32>
    %c0_5 = arith.constant 0 : index
    %c0_6 = arith.constant 0 : index
    %6 = vector.load %arg5[%c0_5, %c0_6] : memref<8x16xf32, #tpu.memory_space<vmem>>, vector<8x16xf32>
    tpu.vector_store %arg5[%c0_5, %c0_6], %5 {strides = array<i32>} : memref<8x16xf32, #tpu.memory_space<vmem>>, vector<8x16xf32>,
    return
  }
  func.func @transform_0(%arg0: i32, %arg1: i32) -> (i32, i32) {
    %c0_i32 = arith.constant 0 : i32
    %c0_i32_0 = arith.constant 0 : i32
    return %arg0, %c0_i32 : i32, i32
  }
  func.func @transform_1(%arg0: i32, %arg1: i32) -> (i32, i32) {
    %c0_i32 = arith.constant 0 : i32
    %c0_i32_0 = arith.constant 0 : i32
    return %c0_i32, %arg1 : i32, i32
  }
  func.func @transform_2(%arg0: i32, %arg1: i32) -> (i32, i32) {
    %c0_i32 = arith.constant 0 : i32
    %c0_i32_0 = arith.constant 0 : i32
    return %c0_i32, %arg1 : i32, i32
  }
  func.func @transform_3(%arg0: i32, %arg1: i32) -> (i32, i32) {
    %c0_i32 = arith.constant 0 : i32
    return %arg0, %arg1 : i32, i32
  }
}

</mosaic_0001>

<bundles_post_ra>
// kernel: tpu_custom_call.1
= control target key start
LH: loop header
LB: loop body
LE: loop exit
PB: predicated region body
PF: predicated region fallthrough
CT: control target
= control target key end

     0   :  { %8 = vsyncpa [#allocation3], 0  ;;  %s735_s0 = inlined_call_operand.vmem [shape: f32[16,32], index: 0, kind: input, shape index: {}]   ;;  %s736_s1 = inlined_call_operand.vmem [shape: f32[32,16], index: 1, kind: input, shape index: {}]   ;;  %s737_s2 = inlined_call_operand.vmem [shape: f32[1,16], index: 2, kind: input, shape index: {}]   ;;  %s738_s3 = inlined_call_operand.hbm [shape: f32[16,16], index: 3, kind: output, shape index: {}]  }
   0x1   :  { %10 = vsyncpa [#allocation3 + $0x1], 0  ;;  %s608_s12 = smov 0   ;;  %s610_s13 = smov 0  }
   0x2   :  { %s612_s14 = smov 0   ;;  %s614_s15 = smov 0  }
   0x3   :  { %s616_s16 = smov 0   ;;  %s618_s17 = smov 0  }
   0x4 LB: > { %s409_s18 = sadd.s32 4294967295, %s582_s17   ;;  %s410_s19 = sadd.s32 4294967294, %s582_s17   ;;  %s582_s17 = sphi %s618_s17, %s16_s17   ;;  %s578_s16 = sphi %s616_s16, %s745_s16   ;;  %s574_s15 = sphi %s614_s15, %s744_s15   ;;  %s570_s14 = sphi %s612_s14, %s743_s14   ;;  %s566_s13 = sphi %s610_s13, %s742_s13   ;;  %s562_s12 = sphi %s608_s12, %s741_s12  }
   0x5   : > { %s28_s20 = sadd.s32 1, %s578_s16  ;;  %s115_s21 = sadd.s32 1, %s570_s14 }
   0x6   : > { %p30_p0 = scmp.ge.s32.totalorder %s28_s20, 2  ;;  %p125_p1 = scmp.ne.s32.totalorder %s570_s14, %s566_s13 }
   0x7   : > { %p126_p2 = scmp.eq.s32.totalorder %s409_s18, 1  ;;  %p131_p3 = scmp.ne.s32.totalorder %s566_s13, %s562_s12 }
   0x8   : > { %s747_s20 = smov (%p30_p0, %s28_s20), 0  ;;  %p132_p5 = scmp.eq.s32.totalorder %s410_s19, 1 }
   0x9   : > { %p648_p4 = por %p126_p2, %p125_p1  ;;  %s110_s23 = ssub.s32 %s578_s16, %s747_s20 }
   0xa   : > { %p415_p6 = scmp.ge.s32.totalorder %s582_s17, 1  ;;  %p113_p7 = scmp.eq.s32.totalorder %s110_s23, 0 }
   0xb   : > { %p655_p8 = por %p132_p5, %p131_p3  ;;  %p170_p9 = scmp.lt.s32.totalorder %s582_s17, 3 }
   0xc   : > { %s661_s25 = scalar_select %p113_p7, %s570_s14, %s115_s21  }
   0xd   : > { %p171_p10 = pnand %p415_p6, %p170_p9 }
   0xe   : > { %v212_v0 = vld [vmem:[%s736_s1] sm:$0xff] (!%p171_p10)  ;;  %v213_v1 = vld [vmem:[%s736_s1 + $0x8] sm:$0xff] (!%p171_p10)  ;;  %v214_v2 = vld [vmem:[%s736_s1 + $0x10] sm:$0xff] (!%p171_p10)  ;;  %v584_v3 = vmov (!%p171_p10), 0.0|0.0   ;;  %vm585_vm0 = vmmov (!%p171_p10), 0   ;;  %v586_v6 = vmov (!%p171_p10), 0.0  }
   0xf   : > { %174 = sbr.rel (%p171_p10) target bundleno = 255 (0xff), region = 32  ;;  %440 = vmatprep.subr.bf16.mxu0 (!%p171_p10), %v584_v3  ;;  %v441_v4 = vpack.c.bf16 (!%p171_p10), %v213_v1, %v212_v0  ;;  %v215_v5 = vld [vmem:[%s736_s1 + $0x18] sm:$0xff] (!%p171_p10)  ;;  %437 = vmatprep.mubr.msk.f32.mxu0 (!%p171_p10), %vm585_vm0, %v586_v6  ;;  %p200_p11 = scmp.lt.s32.totalorder (!%p171_p10), %s574_s15, 1  ;;  %vm223_vm1 = vcmask (!%p171_p10), 261120   ;;  %v418_v9 = vld [vmem:[%s737_s2] ss:$0 sm:$0xff] (!%p171_p10) }
  0x10   : > { %v444_v7 = vpack.c.bf16 (!%p171_p10), %v215_v5, %v214_v2  ;;  %s197_s18 = sand.u32 (!%p171_p10), 1, %s566_s13   ;;  %s421_s26 = sshll.u32 (!%p171_p10), %s574_s15, 7  ;;  %vm297_vm2 = vcmask (!%p171_p10), 130048  }
  0x11   : > { %442 = vmatpush3.bf16.msra.mxu0 (!%p171_p10), %v441_v4  ;;  %s416_s19 = sshll.u32 (!%p171_p10), %s197_s18, 3  ;;  %s688_s4 = scalar_lea.hbm (!%p171_p10), %s738_s3, %s421_s26 }
  0x12   : > { %443 = vmatprep.subr.bf16.mxu0 (!%p171_p10), %v584_v3  ;;  %s199_s27 = scalar_lea.vmem (!%p171_p10), [#allocation2], %s416_s19  ;;  %s300_s5 = scalar_lea.sflag (!%p171_p10), [#allocation3], %s197_s18 }
  0x13   : > { %s314_s28 = sshll.u32 (!%p171_p10), %s199_s27, 4  ;;  %s690_s28 = int_to_ptr.vmem [resolvable:$true] %s314_s28 }
  0x14   : > { %s504_s6 = scalar_lea.vmem (!%p171_p10), %s690_s28, 128 }
  0x15   : > { %445 = vmatpush3.bf16.msra.mxu0 (!%p171_p10), %v444_v7  ;;  %p505_p12 = scmp.ne.s32.totalorder (!%p171_p10), %s690_s28, %s504_s6 }
  0x16   : > { %s201_s7 = scalar_select %p200_p11, %s574_s15, 1 }
  0x17   : > { %p506_p13 = pnand %p505_p12, %p648_p4  ;;  %s587_s15 = smov [#allocation2]  }
  0x18   : > { %s417_s8 = sshll.u32 %s201_s7, 3  ;;  %s508_s7 = sshll.u32 %s587_s15, 4  ;;  %s509_s7 = int_to_ptr.vmem [resolvable:$false] %s508_s7 }
  0x19   : > { %s203_s11 = scalar_lea.vmem %s735_s0, %s417_s8  ;;  %p507_p0 = pneg %p506_p13 }
  0x1a   : > { %v211_v8 = vld [vmem:[%s203_s11] sm:$0xff]  ;;  %s510_s8 = scalar_lea.vmem %s509_s7, 256  ;;  %p511_p1 = scmp.lt.s32.totalorder %s690_s28, %s509_s7 }
  0x1b   : > { %438 = vmatmul.mubr.msk.f32.vlgmr.msra.gmra.mrb[0].mxu0 %vm223_vm1, %v211_v8  ;;  %p512_p2 = scmp.lt.s32.totalorder %s510_s8, %s504_s6 }
  0x1d   : > { %p513_p3 = por %p512_p2, %p511_p1 }
  0x1f   : > { %p514_p5 = pnand %p513_p3, %p507_p0 }
  0xee   : > { %v293_v10 = vpop.f32.mrb[0].mxu0 }
  0xef   : > { %v294_v11 = vadd.f32 %v418_v9, %v293_v10  ;;  %v439_v12 = vpop.f32.mrb[1].mxu0 }
  0xf1   : > { %298 = vst.msk [vmem:[%s199_s27] sm:$0xff] %vm297_vm2, %v294_v11 }
  0xf2   : > { %517 = shalt.err (!%p514_p5)
}
  0xf3   : > { %s518_s9 = scalar_lea.hbm %s688_s4, 128  ;;  %s522_s18 = scalar_lea.hbm %s738_s3, 256 }
  0xf4   : > { %p519_p6 = scmp.ne.s32.totalorder %s688_s4, %s518_s9  ;;  %p523_p10 = scmp.lt.u32.totalorder %s688_s4, %s738_s3 }
  0xf5   : > { %p524_p11 = scmp.lt.u32.totalorder %s522_s18, %s518_s9  ;;  %p526_p13 = scmp.lt.u32.totalorder %s518_s9, %s688_s4 }
  0xf6   : > { %p520_p7 = pnand %p519_p6, %p648_p4 }
  0xf7   : > { %p525_p12 = por %p524_p11, %p523_p10 }
  0xf8   : > { %p521_p9 = pneg %p520_p7 }
  0xf9   : > { %p527_p0 = por %p526_p13, %p525_p12 }
  0xfb   : > { %p528_p1 = pnand %p527_p0, %p521_p9 }
  0xfd   : > { %531 = shalt.err (!%p528_p1)
}
  0xfe   : > { %446 = dma.vmem_to_hbm [thread:$0]  (%p648_p4), %s690_s28, 128, %s688_s4, %s300_s5  }
  0xff PF: > { %p452_p2 = scmp.ge.s32.totalorder %s582_s17, 2  ;;  %s326_s23 = sand.u32 1, %s562_s12  }
 0x100   : > { %s327_s26 = scalar_lea.sflag [#allocation3], %s326_s23 }
 0x101   : > { %p449_p3 = pnand %p452_p2, %p655_p8 }
 0x103   : > { %557 = dma.done.wait (!%p449_p3), %s327_s26, 128  }
 0x104   : > { %559 = vsyncadd (!%p449_p3), %s327_s26, 4294967168  ;;  %s16_s17 = sadd.s32 1, %s582_s17   ;;  %s741_s12 = smov %s566_s13 }
 0x105   : > { %p13_p5 = scmp.ge.s32.totalorder %s16_s17, 4   ;;  %s742_s13 = smov %s570_s14 }
 0x106   : > { %s743_s14 = smov %s661_s25  ;;  %s744_s15 = smov %s578_s16 }
 0x107   : > { %s745_s16 = smov %s747_s20  ;;  %15 = sbr.rel (!%p13_p5) target bundleno = 4 (0x4), region = 73 }
 0x10e   :  { %332 = vsyncpa [#allocation3], 1 }
 0x10f   :  { %334 = vsyncpa [#allocation3 + $0x1], 1 }

// kernel: tpu_custom_call.1
= control target key start
LH: loop header
LB: loop body
LE: loop exit
PB: predicated region body
PF: predicated region fallthrough
CT: control target
= control target key end

     0   :  { %8 = vsyncpa [#allocation3], 0  ;;  %s735_s0 = inlined_call_operand.vmem [shape: f32[16,32], index: 0, kind: input, shape index: {}]   ;;  %s736_s1 = inlined_call_operand.vmem [shape: f32[32,16], index: 1, kind: input, shape index: {}]   ;;  %s737_s2 = inlined_call_operand.vmem [shape: f32[1,16], index: 2, kind: input, shape index: {}]   ;;  %s738_s3 = inlined_call_operand.hbm [shape: f32[16,16], index: 3, kind: output, shape index: {}]  }
   0x1   :  { %10 = vsyncpa [#allocation3 + $0x1], 0  ;;  %s608_s12 = smov 0   ;;  %s610_s13 = smov 0  }
   0x2   :  { %s612_s14 = smov 0   ;;  %s614_s15 = smov 0  }
   0x3   :  { %s616_s16 = smov 0   ;;  %s618_s17 = smov 0  }
   0x4 LB: > { %s409_s18 = sadd.s32 4294967295, %s582_s17   ;;  %s410_s19 = sadd.s32 4294967294, %s582_s17   ;;  %s582_s17 = sphi %s618_s17, %s16_s17   ;;  %s578_s16 = sphi %s616_s16, %s745_s16   ;;  %s574_s15 = sphi %s614_s15, %s744_s15   ;;  %s570_s14 = sphi %s612_s14, %s743_s14   ;;  %s566_s13 = sphi %s610_s13, %s742_s13   ;;  %s562_s12 = sphi %s608_s12, %s741_s12  }
   0x5   : > { %s28_s20 = sadd.s32 1, %s578_s16  ;;  %s115_s21 = sadd.s32 1, %s570_s14 }
   0x6   : > { %p30_p0 = scmp.ge.s32.totalorder %s28_s20, 2  ;;  %p125_p1 = scmp.ne.s32.totalorder %s570_s14, %s566_s13 }
   0x7   : > { %p126_p2 = scmp.eq.s32.totalorder %s409_s18, 1  ;;  %p131_p3 = scmp.ne.s32.totalorder %s566_s13, %s562_s12 }
   0x8   : > { %s747_s20 = smov (%p30_p0, %s28_s20), 0  ;;  %p132_p5 = scmp.eq.s32.totalorder %s410_s19, 1 }
   0x9   : > { %p648_p4 = por %p126_p2, %p125_p1  ;;  %s110_s23 = ssub.s32 %s578_s16, %s747_s20 }
   0xa   : > { %p415_p6 = scmp.ge.s32.totalorder %s582_s17, 1  ;;  %p113_p7 = scmp.eq.s32.totalorder %s110_s23, 0 }
   0xb   : > { %p655_p8 = por %p132_p5, %p131_p3  ;;  %p170_p9 = scmp.lt.s32.totalorder %s582_s17, 3 }
   0xc   : > { %s661_s25 = scalar_select %p113_p7, %s570_s14, %s115_s21  }
   0xd   : > { %p171_p10 = pnand %p415_p6, %p170_p9 }
   0xe   : > { %v212_v0 = vld [vmem:[%s736_s1] sm:$0xff] (!%p171_p10)  ;;  %v213_v1 = vld [vmem:[%s736_s1 + $0x8] sm:$0xff] (!%p171_p10)  ;;  %v214_v2 = vld [vmem:[%s736_s1 + $0x10] sm:$0xff] (!%p171_p10)  ;;  %v584_v3 = vmov (!%p171_p10), 0.0|0.0   ;;  %vm585_vm0 = vmmov (!%p171_p10), 0   ;;  %v586_v6 = vmov (!%p171_p10), 0.0  }
   0xf   : > { %174 = sbr.rel (%p171_p10) target bundleno = 255 (0xff), region = 32  ;;  %440 = vmatprep.subr.bf16.mxu0 (!%p171_p10), %v584_v3  ;;  %v441_v4 = vpack.c.bf16 (!%p171_p10), %v213_v1, %v212_v0  ;;  %v215_v5 = vld [vmem:[%s736_s1 + $0x18] sm:$0xff] (!%p171_p10)  ;;  %437 = vmatprep.mubr.msk.f32.mxu0 (!%p171_p10), %vm585_vm0, %v586_v6  ;;  %p200_p11 = scmp.lt.s32.totalorder (!%p171_p10), %s574_s15, 1  ;;  %vm223_vm1 = vcmask (!%p171_p10), 261120   ;;  %v418_v9 = vld [vmem:[%s737_s2] ss:$0 sm:$0xff] (!%p171_p10) }
  0x10   : > { %v444_v7 = vpack.c.bf16 (!%p171_p10), %v215_v5, %v214_v2  ;;  %s197_s18 = sand.u32 (!%p171_p10), 1, %s566_s13   ;;  %s421_s26 = sshll.u32 (!%p171_p10), %s574_s15, 7  ;;  %vm297_vm2 = vcmask (!%p171_p10), 130048  }
  0x11   : > { %442 = vmatpush3.bf16.msra.mxu0 (!%p171_p10), %v441_v4  ;;  %s416_s19 = sshll.u32 (!%p171_p10), %s197_s18, 3  ;;  %s688_s4 = scalar_lea.hbm (!%p171_p10), %s738_s3, %s421_s26 }
  0x12   : > { %443 = vmatprep.subr.bf16.mxu0 (!%p171_p10), %v584_v3  ;;  %s199_s27 = scalar_lea.vmem (!%p171_p10), [#allocation2], %s416_s19  ;;  %s300_s5 = scalar_lea.sflag (!%p171_p10), [#allocation3], %s197_s18 }
  0x13   : > { %s314_s28 = sshll.u32 (!%p171_p10), %s199_s27, 4  ;;  %s690_s28 = int_to_ptr.vmem [resolvable:$true] %s314_s28 }
  0x14   : > { %s504_s6 = scalar_lea.vmem (!%p171_p10), %s690_s28, 128 }
  0x15   : > { %445 = vmatpush3.bf16.msra.mxu0 (!%p171_p10), %v444_v7  ;;  %p505_p12 = scmp.ne.s32.totalorder (!%p171_p10), %s690_s28, %s504_s6 }
  0x16   : > { %s201_s7 = scalar_select %p200_p11, %s574_s15, 1 }
  0x17   : > { %p506_p13 = pnand %p505_p12, %p648_p4  ;;  %s587_s15 = smov [#allocation2]  }
  0x18   : > { %s417_s8 = sshll.u32 %s201_s7, 3  ;;  %s508_s7 = sshll.u32 %s587_s15, 4  ;;  %s509_s7 = int_to_ptr.vmem [resolvable:$false] %s508_s7 }
  0x19   : > { %s203_s11 = scalar_lea.vmem %s735_s0, %s417_s8  ;;  %p507_p0 = pneg %p506_p13 }
  0x1a   : > { %v211_v8 = vld [vmem:[%s203_s11] sm:$0xff]  ;;  %s510_s8 = scalar_lea.vmem %s509_s7, 256  ;;  %p511_p1 = scmp.lt.s32.totalorder %s690_s28, %s509_s7 }
  0x1b   : > { %438 = vmatmul.mubr.msk.f32.vlgmr.msra.gmra.mrb[0].mxu0 %vm223_vm1, %v211_v8  ;;  %p512_p2 = scmp.lt.s32.totalorder %s510_s8, %s504_s6 }
  0x1d   : > { %p513_p3 = por %p512_p2, %p511_p1 }
  0x1f   : > { %p514_p5 = pnand %p513_p3, %p507_p0 }
  0xee   : > { %v293_v10 = vpop.f32.mrb[0].mxu0 }
  0xef   : > { %v294_v11 = vadd.f32 %v418_v9, %v293_v10  ;;  %v439_v12 = vpop.f32.mrb[1].mxu0 }
  0xf1   : > { %298 = vst.msk [vmem:[%s199_s27] sm:$0xff] %vm297_vm2, %v294_v11 }
  0xf2   : > { %517 = shalt.err (!%p514_p5)
}
  0xf3   : > { %s518_s9 = scalar_lea.hbm %s688_s4, 128  ;;  %s522_s18 = scalar_lea.hbm %s738_s3, 256 }
  0xf4   : > { %p519_p6 = scmp.ne.s32.totalorder %s688_s4, %s518_s9  ;;  %p523_p10 = scmp.lt.u32.totalorder %s688_s4, %s738_s3 }
  0xf5   : > { %p524_p11 = scmp.lt.u32.totalorder %s522_s18, %s518_s9  ;;  %p526_p13 = scmp.lt.u32.totalorder %s518_s9, %s688_s4 }
  0xf6   : > { %p520_p7 = pnand %p519_p6, %p648_p4 }
  0xf7   : > { %p525_p12 = por %p524_p11, %p523_p10 }
  0xf8   : > { %p521_p9 = pneg %p520_p7 }
  0xf9   : > { %p527_p0 = por %p526_p13, %p525_p12 }
  0xfb   : > { %p528_p1 = pnand %p527_p0, %p521_p9 }
  0xfd   : > { %531 = shalt.err (!%p528_p1)
}
  0xfe   : > { %446 = dma.vmem_to_hbm [thread:$0]  (%p648_p4), %s690_s28, 128, %s688_s4, %s300_s5  }
  0xff PF: > { %p452_p2 = scmp.ge.s32.totalorder %s582_s17, 2  ;;  %s326_s23 = sand.u32 1, %s562_s12  }
 0x100   : > { %s327_s26 = scalar_lea.sflag [#allocation3], %s326_s23 }
 0x101   : > { %p449_p3 = pnand %p452_p2, %p655_p8 }
 0x103   : > { %557 = dma.done.wait (!%p449_p3), %s327_s26, 128  }
 0x104   : > { %559 = vsyncadd (!%p449_p3), %s327_s26, 4294967168  ;;  %s16_s17 = sadd.s32 1, %s582_s17   ;;  %s741_s12 = smov %s566_s13 }
 0x105   : > { %p13_p5 = scmp.ge.s32.totalorder %s16_s17, 4   ;;  %s742_s13 = smov %s570_s14 }
 0x106   : > { %s743_s14 = smov %s661_s25  ;;  %s744_s15 = smov %s578_s16 }
 0x107   : > { %s745_s16 = smov %s747_s20  ;;  %15 = sbr.rel (!%p13_p5) target bundleno = 4 (0x4), region = 73 }
 0x10e   :  { %332 = vsyncpa [#allocation3], 1 }
 0x10f   :  { %334 = vsyncpa [#allocation3 + $0x1], 1 }

</bundles_post_ra>
